<compile_context>
chip_gen: v7x
topology: tpu7x:2x2x1
jax: 0.10.0
libtpu: 0.0.40
codegen_flags: <defaults>
</compile_context>

<pallas_src>
import functools
from typing import Any, NamedTuple

import jax
import jax.numpy as jnp
from jax import lax
from jax.experimental import pallas as pl
from jax.experimental.pallas import tpu as pltpu

_LEAKY_SLOPE = 0.3


def _leaky_relu(x, slope=_LEAKY_SLOPE):
    return jnp.where(x > 0, x, slope * x)


def _round_up(n, m):
    return ((n + m - 1) // m) * m


@functools.lru_cache(maxsize=1)
def _tpu_generation():
    """(physical_vmem_bytes, tensorcores_per_chip), conservative defaults."""
    vmem = 128 * 1024 * 1024
    cores = 1
    try:
        info = pltpu.get_tpu_info()
        vmem = int(getattr(info, "vmem_capacity_bytes", vmem))
    except Exception:
        pass  # hardware probe only; fall back to conservative defaults
    try:
        kind = jax.devices()[0].device_kind.lower()
    except Exception:
        kind = ""
    if "v7" in kind:
        cores = 2
        vmem = min(vmem, 64 * 1024 * 1024)
    return vmem, cores


@functools.lru_cache(maxsize=1)
def _single_buffer_supported():
    """One-time probe: does this build accept pipeline_mode=pl.Buffered(1)?"""
    def _k(w_ref, o_ref):
        o_ref[...] = w_ref[...] + 1.0

    try:
        f = pl.pallas_call(
            _k,
            out_shape=jax.ShapeDtypeStruct((8, 128), jnp.float32),
            grid_spec=pltpu.PrefetchScalarGridSpec(
                num_scalar_prefetch=0,
                grid=(2,),
                in_specs=[pl.BlockSpec((8, 128), lambda i: (0, 0),
                                       pipeline_mode=pl.Buffered(1))],
                out_specs=pl.BlockSpec((8, 128), lambda i: (0, 0)),
            ),
        )
        y = jax.block_until_ready(f(jnp.zeros((8, 128), jnp.float32)))
        return bool(jnp.allclose(y, 1.0))
    except Exception:
        return False


def _pick_batch_tile(B, num_cores):
    """Biggest tile <= 1024 rows; on 2-TC chips force >=2 grid steps so the
    'parallel' batch axis actually shards across both TensorCores."""
    max_tile = 1024
    min_steps = 2 if (num_cores >= 2 and B >= 256) else 1
    steps = max(min_steps, pl.cdiv(B, max_tile))
    if steps == 1:
        return B
    return _round_up(pl.cdiv(B, steps), 8)


class PreparedDecoderParams(NamedTuple):
    w1: Any
    b1: Any
    w2: Any
    b2: Any
    w3: Any
    b3: Any
    d_in: int
    h_pad: int
    d_out: int
    d_out_pad: int
    compute_dtype: Any


def prepare_decoder_params(params, *, compute_dtype=jnp.float32):
    """One-time weight prep: cast matmul operands to `compute_dtype` and
    zero-pad hidden/output feature dims up to multiples of 128 (lane-dense).
    Zero padding is exact: padded hidden units stay 0 through LeakyReLU and
    padded W2/W3 rows contribute nothing."""
    w1, b1, w2, b2, w3, b3 = params
    d_in, H = w1.shape
    d_out = w3.shape[1]
    h_pad = _round_up(H, 128)
    d_out_pad = _round_up(d_out, 128)

    def pad2(a, rows, cols):
        return jnp.pad(a, ((0, rows - a.shape[0]), (0, cols - a.shape[1])))

    w1p = pad2(w1, d_in, h_pad).astype(compute_dtype)
    w2p = pad2(w2, h_pad, h_pad).astype(compute_dtype)
    w3p = pad2(w3, h_pad, d_out_pad).astype(compute_dtype)
    b1p = jnp.pad(b1, (0, h_pad - H)).reshape(1, h_pad).astype(jnp.float32)
    b2p = jnp.pad(b2, (0, h_pad - H)).reshape(1, h_pad).astype(jnp.float32)
    b3p = (jnp.pad(b3, (0, d_out_pad - d_out))
           .reshape(1, d_out_pad).astype(jnp.float32))
    return PreparedDecoderParams(w1p, b1p, w2p, b2p, w3p, b3p,
                                 d_in, h_pad, d_out, d_out_pad, compute_dtype)


def decoder_kernel(x_ref, w1_ref, b1_ref, w2_ref, b2_ref, w3_ref, b3_ref,
                   out_ref, *, outputpositive: bool, compute_dtype):
    # x arrives in f32; the cast to the MXU operand dtype is a nearly-free
    # VPU op hidden under the MXU (halves x-side HBM traffic vs casting in
    # the wrapper).  All matmuls accumulate in f32; bias add / LeakyReLU /
    # sigmoid stay in f32 (v5e VPU/EUP have no bf16 datapath).
    x = x_ref[...].astype(compute_dtype)
    h = jnp.dot(x, w1_ref[...], preferred_element_type=jnp.float32)
    h = _leaky_relu(h + b1_ref[...])
    h = jnp.dot(h.astype(compute_dtype), w2_ref[...],
                preferred_element_type=jnp.float32)
    h = _leaky_relu(h + b2_ref[...])
    y = jnp.dot(h.astype(compute_dtype), w3_ref[...],
                preferred_element_type=jnp.float32) + b3_ref[...]
    if outputpositive:
        y = jax.nn.sigmoid(y)          # EUP slot -> effectively free
    out_ref[...] = y.astype(out_ref.dtype)


def decoder_forward(x, prep, *, outputpositive=True, batch_tile=None,
                    return_padded=False):
    """Fused 3-layer MLP decoder. Returns (generated_x, generated_x).

    `prep` should come from `prepare_decoder_params` (raw param tuples are
    accepted but re-prepared on every call, which wastes HBM bandwidth)."""
    if not isinstance(prep, PreparedDecoderParams):
        prep = prepare_decoder_params(prep)

    B, d_in = x.shape
    assert d_in == prep.d_in, "input feature dim mismatch"

    vmem_phys, num_cores = _tpu_generation()
    if batch_tile is None:
        batch_tile = _pick_batch_tile(B, num_cores)
    batch_tile = int(batch_tile)

    grid_b = pl.cdiv(B, batch_tile)
    b_pad = grid_b * batch_tile
    x_in = x if b_pad == B else jnp.pad(x, ((0, b_pad - B), (0, 0)))

    # Weights have constant index_maps (fetched once); single-buffer them only
    # when they are large enough to matter and the build supports Buffered(1).
    weight_bytes = ((prep.w1.size + prep.w2.size + prep.w3.size)
                    * prep.w1.dtype.itemsize)
    single_buf = weight_bytes > (8 << 20) and _single_buffer_supported()
    # TODO(synk): when weight_bytes exceeds ~24-32 MiB on v7x (64 MiB VMEM),
    # switch to a K-tiled accumulator path (grid axis over h_pad marked
    # "arbitrary", f32 VMEM scratch, pl.when init/finalize) instead of keeping
    # W2/W3 fully resident.

    def wspec(shape):
        if single_buf:
            return pl.BlockSpec(shape, lambda i: (0, 0),
                                pipeline_mode=pl.Buffered(1))
        return pl.BlockSpec(shape, lambda i: (0, 0))

    # ~16 MiB headroom under physical VMEM: ~48 MiB on v7x, 96 MiB on v5e/v6e.
    vmem_limit = max(32 << 20, min(96 << 20, vmem_phys - (16 << 20)))

    kernel = functools.partial(decoder_kernel, outputpositive=outputpositive,
                               compute_dtype=prep.compute_dtype)

    out_padded = pl.pallas_call(
        kernel,
        out_shape=jax.ShapeDtypeStruct((b_pad, prep.d_out_pad), jnp.float32),
        grid_spec=pltpu.PrefetchScalarGridSpec(
            num_scalar_prefetch=0,
            grid=(grid_b,),
            in_specs=[
                pl.BlockSpec((batch_tile, d_in), lambda i: (i, 0)),  # x (f32)
                wspec((d_in, prep.h_pad)),          # W1
                wspec((1, prep.h_pad)),             # b1
                wspec((prep.h_pad, prep.h_pad)),    # W2
                wspec((1, prep.h_pad)),             # b2
                wspec((prep.h_pad, prep.d_out_pad)),  # W3
                wspec((1, prep.d_out_pad)),         # b3
            ],
            out_specs=pl.BlockSpec((batch_tile, prep.d_out_pad),
                                   lambda i: (i, 0)),
        ),
        compiler_params=pltpu.CompilerParams(
            dimension_semantics=("parallel",),
            vmem_limit_bytes=vmem_limit,
        ),
    )(x_in, prep.w1, prep.b1, prep.w2, prep.b2, prep.w3, prep.b3)

    if return_padded:
        out = out_padded if b_pad == B else out_padded[:B]
    elif b_pad == B and prep.d_out == prep.d_out_pad:
        out = out_padded
    else:
        out = out_padded[:B, :prep.d_out]
    return out, out


def init_decoder_params(key, latent_dim, hidden_dim, output_dim, condition_dim):
    """Deterministic init mimicking nn.Linear: U(-1/sqrt(fan_in), 1/sqrt(fan_in)).
    Weights are stored pre-transposed as (in_features, out_features)."""
    d_in = latent_dim + condition_dim
    keys = jax.random.split(key, 6)

    def linear(kw, kb, fan_in, fan_out):
        bound = 1.0 / jnp.sqrt(fan_in)
        w = jax.random.uniform(kw, (fan_in, fan_out), jnp.float32, -bound, bound)
        b = jax.random.uniform(kb, (fan_out,), jnp.float32, -bound, bound)
        return w, b

    w1, b1 = linear(keys[0], keys[1], d_in, hidden_dim)
    w2, b2 = linear(keys[2], keys[3], hidden_dim, hidden_dim)
    w3, b3 = linear(keys[4], keys[5], hidden_dim, output_dim)
    return (w1, b1, w2, b2, w3, b3)


def reference_forward(x, params, outputpositive=True,
                      compute_dtype=jnp.float32):
    """Pure-JAX reference.  `compute_dtype` emulates the kernel's operand cast
    (e.g. bf16 operands, f32 accumulate) so comparisons are apples-to-apples."""
    w1, b1, w2, b2, w3, b3 = params
    c = lambda a: a.astype(compute_dtype).astype(jnp.float32)
    mm = lambda a, b: jnp.dot(a, b, precision=lax.Precision.HIGHEST)
    h = _leaky_relu(mm(c(x), c(w1)) + b1)
    h = _leaky_relu(mm(c(h), c(w2)) + b2)
    y = mm(c(h), c(w3)) + b3
    if outputpositive:
        y = jax.nn.sigmoid(y)
    return y, y


if __name__ == "__main__":
    latent_dim, condition_dim, hidden_dim, output_dim = 8, 8, 32, 16
    batch = 8

    key = jax.random.PRNGKey(0)
    k_x, k_p, k_x2 = jax.random.split(key, 3)

    raw_params = init_decoder_params(k_p, latent_dim, hidden_dim, output_dim,
                                     condition_dim)
    x = jax.random.normal(k_x, (batch, latent_dim + condition_dim), jnp.float32)

    # f32 path (matches the PyTorch module's numerics).
    prep32 = prepare_decoder_params(raw_params, compute_dtype=jnp.float32)
    y, y2 = decoder_forward(x, prep32, outputpositive=True)
    jax.block_until_ready(y)
    y_ref, _ = reference_forward(x, raw_params, outputpositive=True)
    assert y.shape == (batch, output_dim)
    assert jnp.allclose(y, y_ref, atol=1e-3, rtol=1e-3), "f32 path mismatch"
    assert (y is y2) or jnp.array_equal(y, y2)

    # bf16 MXU-operand / f32-accumulate path (preferred TPU configuration).
    prep16 = prepare_decoder_params(raw_params, compute_dtype=jnp.bfloat16)
    y16, _ = decoder_forward(x, prep16, outputpositive=True)
    jax.block_until_ready(y16)
    y16_ref, _ = reference_forward(x, raw_params, outputpositive=True,
                                   compute_dtype=jnp.bfloat16)
    assert jnp.allclose(y16, y16_ref, atol=2e-2, rtol=2e-2), "bf16 path mismatch"

    # Ragged batch exercising the multi-step pipelined grid + row padding.
    xb = jax.random.normal(k_x2, (260, latent_dim + condition_dim), jnp.float32)
    yl, _ = decoder_forward(xb, prep32, outputpositive=True, batch_tile=128)
    jax.block_until_ready(yl)
    yl_ref, _ = reference_forward(xb, raw_params, outputpositive=True)
    assert yl.shape == (260, output_dim)
    assert jnp.allclose(yl, yl_ref, atol=1e-3, rtol=1e-3), "tiled path mismatch"

    print("KERNEL_OK")
</pallas_src>

<mosaic_0001>
module attributes {stable_mosaic.version = 11 : i64} {
  func.func @decoder_kernel(%arg0: i32, %arg1: memref<8x16xf32, #tpu.memory_space<vmem>>, %arg2: memref<16x128xf32, #tpu.memory_space<vmem>>, %arg3: memref<1x128xf32, #tpu.memory_space<vmem>>, %arg4: memref<128x128xf32, #tpu.memory_space<vmem>>, %arg5: memref<1x128xf32, #tpu.memory_space<vmem>>, %arg6: memref<128x128xf32, #tpu.memory_space<vmem>>, %arg7: memref<1x128xf32, #tpu.memory_space<vmem>>, %arg8: memref<8x128xf32, #tpu.memory_space<vmem>>) attributes {dimension_semantics = [#tpu.dimension_semantics<parallel>], iteration_bounds = array<i64: 1>, scalar_prefetch = 0 : i64, scratch_operands = 0 : i64, tpu.core_type = #tpu.core_type<tc>, window_params = [{transform_indices = @transform_0, window_bounds = array<i64: 8, 16>}, {pipeline_mode = #tpu.pipeline_mode<synchronous>, transform_indices = @transform_1, window_bounds = array<i64: 16, 128>}, {pipeline_mode = #tpu.pipeline_mode<synchronous>, transform_indices = @transform_2, window_bounds = array<i64: 1, 128>}, {pipeline_mode = #tpu.pipeline_mode<synchronous>, transform_indices = @transform_3, window_bounds = array<i64: 128, 128>}, {pipeline_mode = #tpu.pipeline_mode<synchronous>, transform_indices = @transform_4, window_bounds = array<i64: 1, 128>}, {pipeline_mode = #tpu.pipeline_mode<synchronous>, transform_indices = @transform_5, window_bounds = array<i64: 128, 128>}, {pipeline_mode = #tpu.pipeline_mode<synchronous>, transform_indices = @transform_6, window_bounds = array<i64: 1, 128>}, {transform_indices = @transform_7, window_bounds = array<i64: 8, 128>}]} {
    %c0 = arith.constant 0 : index
    %c0_0 = arith.constant 0 : index
    %0 = vector.load %arg1[%c0, %c0_0] : memref<8x16xf32, #tpu.memory_space<vmem>>, vector<8x16xf32>
    %c0_1 = arith.constant 0 : index
    %c0_2 = arith.constant 0 : index
    %1 = vector.load %arg2[%c0_1, %c0_2] : memref<16x128xf32, #tpu.memory_space<vmem>>, vector<16x128xf32>
    %cst = arith.constant dense<0.000000e+00> : vector<8x128xf32>
    %2 = tpu.matmul %0, %1, %cst {dimension_numbers = #tpu.dot_dimension_numbers<[1], [0], [0], [1], [0, 0, 1, 1], [], []>} : vector<8x16xf32>, vector<16x128xf32>, vector<8x128xf32> -> vector<8x128xf32>
    %c0_3 = arith.constant 0 : index
    %c0_4 = arith.constant 0 : index
    %3 = vector.load %arg3[%c0_3, %c0_4] : memref<1x128xf32, #tpu.memory_space<vmem>>, vector<1x128xf32>
    %4 = vector.broadcast %3 : vector<1x128xf32> to vector<8x128xf32>
    %5 = arith.addf %2, %4 : vector<8x128xf32>
    %cst_5 = arith.constant 0.000000e+00 : f32
    %6 = vector.broadcast %cst_5 : f32 to vector<8x128xf32>
    %7 = arith.cmpf ogt, %5, %6 : vector<8x128xf32>
    %cst_6 = arith.constant 3.000000e-01 : f32
    %8 = vector.broadcast %cst_6 : f32 to vector<8x128xf32>
    %9 = arith.mulf %8, %5 : vector<8x128xf32>
    %10 = arith.select %7, %5, %9 : vector<8x128xi1>, vector<8x128xf32>
    %c0_7 = arith.constant 0 : index
    %c0_8 = arith.constant 0 : index
    %11 = vector.load %arg4[%c0_7, %c0_8] : memref<128x128xf32, #tpu.memory_space<vmem>>, vector<128x128xf32>
    %cst_9 = arith.constant dense<0.000000e+00> : vector<8x128xf32>
    %12 = tpu.matmul %10, %11, %cst_9 {dimension_numbers = #tpu.dot_dimension_numbers<[1], [0], [0], [1], [0, 0, 1, 1], [], []>} : vector<8x128xf32>, vector<128x128xf32>, vector<8x128xf32> -> vector<8x128xf32>
    %c0_10 = arith.constant 0 : index
    %c0_11 = arith.constant 0 : index
    %13 = vector.load %arg5[%c0_10, %c0_11] : memref<1x128xf32, #tpu.memory_space<vmem>>, vector<1x128xf32>
    %14 = vector.broadcast %13 : vector<1x128xf32> to vector<8x128xf32>
    %15 = arith.addf %12, %14 : vector<8x128xf32>
    %cst_12 = arith.constant 0.000000e+00 : f32
    %16 = vector.broadcast %cst_12 : f32 to vector<8x128xf32>
    %17 = arith.cmpf ogt, %15, %16 : vector<8x128xf32>
    %cst_13 = arith.constant 3.000000e-01 : f32
    %18 = vector.broadcast %cst_13 : f32 to vector<8x128xf32>
    %19 = arith.mulf %18, %15 : vector<8x128xf32>
    %20 = arith.select %17, %15, %19 : vector<8x128xi1>, vector<8x128xf32>
    %c0_14 = arith.constant 0 : index
    %c0_15 = arith.constant 0 : index
    %21 = vector.load %arg6[%c0_14, %c0_15] : memref<128x128xf32, #tpu.memory_space<vmem>>, vector<128x128xf32>
    %cst_16 = arith.constant dense<0.000000e+00> : vector<8x128xf32>
    %22 = tpu.matmul %20, %21, %cst_16 {dimension_numbers = #tpu.dot_dimension_numbers<[1], [0], [0], [1], [0, 0, 1, 1], [], []>} : vector<8x128xf32>, vector<128x128xf32>, vector<8x128xf32> -> vector<8x128xf32>
    %c0_17 = arith.constant 0 : index
    %c0_18 = arith.constant 0 : index
    %23 = vector.load %arg7[%c0_17, %c0_18] : memref<1x128xf32, #tpu.memory_space<vmem>>, vector<1x128xf32>
    %24 = vector.broadcast %23 : vector<1x128xf32> to vector<8x128xf32>
    %25 = arith.addf %22, %24 : vector<8x128xf32>
    %26 = arith.negf %25 : vector<8x128xf32>
    %27 = math.exp %26 : vector<8x128xf32>
    %cst_19 = arith.constant 1.000000e+00 : f32
    %28 = vector.broadcast %cst_19 : f32 to vector<8x128xf32>
    %29 = arith.addf %28, %27 : vector<8x128xf32>
    %30 = arith.divf %28, %29 : vector<8x128xf32>
    %c0_20 = arith.constant 0 : index
    %c0_21 = arith.constant 0 : index
    %31 = vector.load %arg8[%c0_20, %c0_21] : memref<8x128xf32, #tpu.memory_space<vmem>>, vector<8x128xf32>
    tpu.vector_store %arg8[%c0_20, %c0_21], %30 {strides = array<i32>} : memref<8x128xf32, #tpu.memory_space<vmem>>, vector<8x128xf32>,
    return
  }
  func.func @transform_0(%arg0: i32) -> (i32, i32) {
    %c0_i32 = arith.constant 0 : i32
    %c0_i32_0 = arith.constant 0 : i32
    return %arg0, %c0_i32 : i32, i32
  }
  func.func @transform_1(%arg0: i32) -> (i32, i32) {
    %c0_i32 = arith.constant 0 : i32
    %c0_i32_0 = arith.constant 0 : i32
    %c0_i32_1 = arith.constant 0 : i32
    return %c0_i32, %c0_i32_0 : i32, i32
  }
  func.func @transform_2(%arg0: i32) -> (i32, i32) {
    %c0_i32 = arith.constant 0 : i32
    %c0_i32_0 = arith.constant 0 : i32
    %c0_i32_1 = arith.constant 0 : i32
    return %c0_i32, %c0_i32_0 : i32, i32
  }
  func.func @transform_3(%arg0: i32) -> (i32, i32) {
    %c0_i32 = arith.constant 0 : i32
    %c0_i32_0 = arith.constant 0 : i32
    %c0_i32_1 = arith.constant 0 : i32
    return %c0_i32, %c0_i32_0 : i32, i32
  }
  func.func @transform_4(%arg0: i32) -> (i32, i32) {
    %c0_i32 = arith.constant 0 : i32
    %c0_i32_0 = arith.constant 0 : i32
    %c0_i32_1 = arith.constant 0 : i32
    return %c0_i32, %c0_i32_0 : i32, i32
  }
  func.func @transform_5(%arg0: i32) -> (i32, i32) {
    %c0_i32 = arith.constant 0 : i32
    %c0_i32_0 = arith.constant 0 : i32
    %c0_i32_1 = arith.constant 0 : i32
    return %c0_i32, %c0_i32_0 : i32, i32
  }
  func.func @transform_6(%arg0: i32) -> (i32, i32) {
    %c0_i32 = arith.constant 0 : i32
    %c0_i32_0 = arith.constant 0 : i32
    %c0_i32_1 = arith.constant 0 : i32
    return %c0_i32, %c0_i32_0 : i32, i32
  }
  func.func @transform_7(%arg0: i32) -> (i32, i32) {
    %c0_i32 = arith.constant 0 : i32
    %c0_i32_0 = arith.constant 0 : i32
    return %arg0, %c0_i32 : i32, i32
  }
}

</mosaic_0001>

<bundles_post_ra>
// kernel: tpu_custom_call.1
= control target key start
LH: loop header
LB: loop body
LE: loop exit
PB: predicated region body
PF: predicated region fallthrough
CT: control target
= control target key end

     0   :  { %12 = vsyncpa [#allocation3], 0  ;;  %s966_s0 = inlined_call_operand.hbm [shape: f32[8,16], index: 0, kind: input, shape index: {}]   ;;  %s967_s1 = inlined_call_operand.hbm [shape: f32[16,128], index: 1, kind: input, shape index: {}]   ;;  %s968_s2 = inlined_call_operand.hbm [shape: f32[1,128], index: 2, kind: input, shape index: {}]   ;;  %s969_s3 = inlined_call_operand.hbm [shape: f32[128,128], index: 3, kind: input, shape index: {}]   ;;  %s970_s4 = inlined_call_operand.hbm [shape: f32[1,128], index: 4, kind: input, shape index: {}]   ;;  %s971_s5 = inlined_call_operand.hbm [shape: f32[128,128], index: 5, kind: input, shape index: {}]   ;;  %s972_s6 = inlined_call_operand.hbm [shape: f32[1,128], index: 6, kind: input, shape index: {}]   ;;  %s973_s7 = inlined_call_operand.hbm [shape: f32[8,128], index: 7, kind: output, shape index: {}]  }
   0x1   :  { %13 = vsyncpa [#allocation6], 0 }
   0x2   :  { %14 = vsyncpa [#allocation9], 0 }
   0x3   :  { %15 = vsyncpa [#allocation12], 0 }
   0x4   :  { %16 = vsyncpa [#allocation4], 0  ;;  %s788_s24 = smov [#allocation5]   ;;  %s602_s28 = scalar_lea.hbm %s967_s1, 256 }
   0x5   :  { %s32_s25 = sshll.u32 %s788_s24, 4  ;;  %p603_p0 = scmp.ne.s32.totalorder %s967_s1, %s602_s28  ;;  %s33_s25 = int_to_ptr.vmem [resolvable:$true] %s32_s25 }
   0x6   :  { %p606_p1 = scmp.lt.u32.totalorder %s602_s28, %s967_s1 }
   0x8   :  { %p608_p2 = pnand %p606_p1, %p603_p0 }
   0xa   :  { %611 = shalt.err (!%p608_p2)
}
   0xb   :  { %s612_s10 = scalar_lea.vmem %s33_s25, 256  ;;  %p617_p4 = scmp.lt.s32.totalorder %s33_s25, %s33_s25 }
   0xc   :  { %p613_p3 = scmp.ne.s32.totalorder %s33_s25, %s612_s10  ;;  %p618_p5 = scmp.lt.s32.totalorder %s612_s10, %s612_s10 }
   0xe   :  { %p619_p6 = por %p618_p5, %p617_p4 }
  0x10   :  { %p620_p7 = pnand %p619_p6, %p613_p3 }
  0x12   :  { %623 = shalt.err (!%p620_p7)
}
  0x13   :  { %s789_s11 = smov 128   ;;  %s790_s12 = smov 8  }
  0x14   :  { %38 = dma.hbm_to_vmem [thread:$0]  %s967_s1, 256, %s33_s25, [#allocation6], %s789_s11, %s789_s11, %s790_s12  }
  0x15   :  { %s791_s15 = smov [#allocation8]   ;;  %s792_s17 = smov [#allocation11]  }
  0x16   :  { %s54_s16 = sshll.u32 %s791_s15, 4  ;;  %s76_s18 = sshll.u32 %s792_s17, 4  ;;  %s55_s16 = int_to_ptr.vmem [resolvable:$true] %s54_s16  ;;  %s77_s18 = int_to_ptr.vmem [resolvable:$true] %s76_s18 }
  0x17   :  { %s624_s21 = scalar_lea.hbm %s969_s3, 2048 }
  0x18   :  { %p625_p8 = scmp.ne.s32.totalorder %s969_s3, %s624_s21  ;;  %p628_p9 = scmp.lt.u32.totalorder %s624_s21, %s969_s3 }
  0x1a   :  { %p630_p10 = pnand %p628_p9, %p625_p8 }
  0x1c   :  { %633 = shalt.err (!%p630_p10)
}
  0x1d   :  { %s634_s1 = scalar_lea.vmem %s55_s16, 2048  ;;  %p639_p12 = scmp.lt.s32.totalorder %s55_s16, %s55_s16 }
  0x1e   :  { %p635_p11 = scmp.ne.s32.totalorder %s55_s16, %s634_s1  ;;  %p640_p13 = scmp.lt.s32.totalorder %s634_s1, %s634_s1 }
  0x20   :  { %p641_p0 = por %p640_p13, %p639_p12 }
  0x22   :  { %p642_p1 = pnand %p641_p0, %p635_p11 }
  0x24   :  { %645 = shalt.err (!%p642_p1)
}
  0x25   :  { %60 = dma.hbm_to_vmem [thread:$0]  %s969_s3, 2048, %s55_s16, [#allocation9], %s789_s11, %s789_s11, %s790_s12  }
  0x26   :  { %s646_s30 = scalar_lea.hbm %s971_s5, 2048 }
  0x27   :  { %p647_p2 = scmp.ne.s32.totalorder %s971_s5, %s646_s30  ;;  %p650_p3 = scmp.lt.u32.totalorder %s646_s30, %s971_s5 }
  0x29   :  { %p652_p4 = pnand %p650_p3, %p647_p2 }
  0x2b   :  { %655 = shalt.err (!%p652_p4)
}
  0x2c   :  { %s656_s14 = scalar_lea.vmem %s77_s18, 2048  ;;  %p661_p6 = scmp.lt.s32.totalorder %s77_s18, %s77_s18 }
  0x2d   :  { %p657_p5 = scmp.ne.s32.totalorder %s77_s18, %s656_s14  ;;  %p662_p7 = scmp.lt.s32.totalorder %s656_s14, %s656_s14 }
  0x2f   :  { %p663_p8 = por %p662_p7, %p661_p6 }
  0x31   :  { %p664_p9 = pnand %p663_p8, %p657_p5 }
  0x33   :  { %667 = shalt.err (!%p664_p9)
}
  0x34   :  { %82 = dma.hbm_to_vmem [thread:$0]  %s971_s5, 2048, %s77_s18, [#allocation12], %s789_s11, %s789_s11, %s790_s12  }
  0x35   :  { %s793_s16 = smov [#allocation2]   ;;  %s794_s19 = smov [#allocation7]  }
  0x36   :  { %s23_s17 = sshll.u32 %s793_s16, 4  ;;  %s45_s20 = sshll.u32 %s794_s19, 4  ;;  %s24_s17 = int_to_ptr.vmem [resolvable:$true] %s23_s17  ;;  %s46_s20 = int_to_ptr.vmem [resolvable:$true] %s45_s20 }
  0x37   :  { %s668_s23 = scalar_lea.hbm %s966_s0, 128 }
  0x38   :  { %p669_p10 = scmp.ne.s32.totalorder %s966_s0, %s668_s23  ;;  %p672_p11 = scmp.lt.u32.totalorder %s668_s23, %s966_s0 }
  0x3a   :  { %p674_p12 = pnand %p672_p11, %p669_p10 }
  0x3c   :  { %677 = shalt.err (!%p674_p12)
}
  0x3d   :  { %s678_s5 = scalar_lea.vmem %s24_s17, 128  ;;  %p683_p0 = scmp.lt.s32.totalorder %s24_s17, %s24_s17 }
  0x3e   :  { %p679_p13 = scmp.ne.s32.totalorder %s24_s17, %s678_s5  ;;  %p684_p1 = scmp.lt.s32.totalorder %s678_s5, %s678_s5 }
  0x40   :  { %p685_p2 = por %p684_p1, %p683_p0 }
  0x42   :  { %p686_p3 = pnand %p685_p2, %p679_p13 }
  0x44   :  { %689 = shalt.err (!%p686_p3)
}
  0x45   :  { %26 = dma.hbm_to_vmem [thread:$0]  %s966_s0, 128, %s24_s17, [#allocation3]  }
  0x46   :  { %s690_s28 = scalar_lea.hbm %s968_s2, 16 }
  0x47   :  { %p691_p4 = scmp.ne.s32.totalorder %s968_s2, %s690_s28  ;;  %p694_p5 = scmp.lt.u32.totalorder %s690_s28, %s968_s2 }
  0x49   :  { %p696_p6 = pnand %p694_p5, %p691_p4 }
  0x4b   :  { %699 = shalt.err (!%p696_p6)
}
  0x4c   :  { %s700_s10 = scalar_lea.vmem %s46_s20, 16  ;;  %s704_s13 = scalar_lea.vmem %s46_s20, 32 }
  0x4d   :  { %p701_p7 = scmp.ne.s32.totalorder %s46_s20, %s700_s10  ;;  %p705_p8 = scmp.lt.s32.totalorder %s46_s20, %s46_s20 }
  0x4e   :  { %p706_p9 = scmp.lt.s32.totalorder %s704_s13, %s700_s10 }
  0x50   :  { %p707_p10 = por %p706_p9, %p705_p8 }
  0x52   :  { %p708_p11 = pnand %p707_p10, %p701_p7 }
  0x54   :  { %711 = shalt.err (!%p708_p11)
}
  0x55   :  { %48 = dma.hbm_to_vmem [thread:$0]  %s968_s2, 16, %s46_s20, [#allocation6]  }
  0x56   :  { %s795_s3 = smov [#allocation10]   ;;  %s796_s16 = smov [#allocation13]  }
  0x57   :  { %s67_s15 = sshll.u32 %s795_s3, 4  ;;  %s89_s17 = sshll.u32 %s796_s16, 4  ;;  %s68_s15 = int_to_ptr.vmem [resolvable:$true] %s67_s15  ;;  %s90_s17 = int_to_ptr.vmem [resolvable:$true] %s89_s17 }
  0x58   :  { %s712_s22 = scalar_lea.hbm %s970_s4, 16 }
  0x59   :  { %p713_p12 = scmp.ne.s32.totalorder %s970_s4, %s712_s22  ;;  %p716_p13 = scmp.lt.u32.totalorder %s712_s22, %s970_s4 }
  0x5b   :  { %p718_p0 = pnand %p716_p13, %p713_p12 }
  0x5d   :  { %721 = shalt.err (!%p718_p0)
}
  0x5e   :  { %s722_s2 = scalar_lea.vmem %s68_s15, 16  ;;  %s726_s20 = scalar_lea.vmem %s68_s15, 32 }
  0x5f   :  { %p723_p1 = scmp.ne.s32.totalorder %s68_s15, %s722_s2  ;;  %p727_p2 = scmp.lt.s32.totalorder %s68_s15, %s68_s15 }
  0x60   :  { %p728_p3 = scmp.lt.s32.totalorder %s726_s20, %s722_s2 }
  0x62   :  { %p729_p4 = por %p728_p3, %p727_p2 }
  0x64   :  { %p730_p5 = pnand %p729_p4, %p723_p1 }
  0x66   :  { %733 = shalt.err (!%p730_p5)
}
  0x67   :  { %70 = dma.hbm_to_vmem [thread:$0]  %s970_s4, 16, %s68_s15, [#allocation9]  }
  0x68   :  { %s734_s18 = scalar_lea.hbm %s972_s6, 16 }
  0x69   :  { %p735_p6 = scmp.ne.s32.totalorder %s972_s6, %s734_s18  ;;  %p738_p7 = scmp.lt.u32.totalorder %s734_s18, %s972_s6 }
  0x6b   :  { %p740_p8 = pnand %p738_p7, %p735_p6 }
  0x6d   :  { %743 = shalt.err (!%p740_p8)
}
  0x6e   :  { %s744_s8 = scalar_lea.vmem %s90_s17, 16  ;;  %s748_s9 = scalar_lea.vmem %s90_s17, 32 }
  0x6f   :  { %p745_p9 = scmp.ne.s32.totalorder %s90_s17, %s744_s8  ;;  %p749_p10 = scmp.lt.s32.totalorder %s90_s17, %s90_s17 }
  0x70   :  { %p750_p11 = scmp.lt.s32.totalorder %s748_s9, %s744_s8 }
  0x72   :  { %p751_p12 = por %p750_p11, %p749_p10 }
  0x74   :  { %p752_p13 = pnand %p751_p12, %p745_p9 }
  0x76   :  { %755 = shalt.err (!%p752_p13)
}
  0x77   :  { %92 = dma.hbm_to_vmem [thread:$0]  %s972_s6, 16, %s90_s17, [#allocation12]  }
  0x78   :  { %778 = dma.done.wait [#allocation3], 128  }
  0x79   :  { %779 = vsyncadd [#allocation3], 4294967168 }
  0x7a   :  { %780 = dma.done.wait [#allocation6], 272  }
  0x7b   :  { %781 = vsyncadd [#allocation6], 4294967024 }
  0x7c   :  { %782 = dma.done.wait [#allocation9], 2064  }
  0x7d   :  { %783 = vsyncadd [#allocation9], 4294965232 }
  0x7e   :  { %784 = dma.done.wait [#allocation12], 2064  }
  0x7f   :  { %785 = vsyncadd [#allocation12], 4294965232  ;;  %v797_v0 = vmov 0.0|0.0   ;;  %vm798_vm0 = vmmov 0   ;;  %v799_v1 = vmov 0.0   ;;  %v115_v2 = vld [vmem:[#allocation5] sm:$0xff] }
  0x80   :  { %534 = vmatprep.subr.bf16.mxu0 %v797_v0  ;;  %461 = vmatprep.mubr.msk.f32.mxu0 %vm798_vm0, %v799_v1  ;;  %v116_v3 = vld [vmem:[#allocation5 + $0x8] sm:$0xff]  ;;  %v201_v5 = vld [vmem:[#allocation8] sm:$0xff]  ;;  %v202_v6 = vld [vmem:[#allocation8 + $0x8] sm:$0xff]  ;;  %vm124_vm1 = vcmask 130048   ;;  %s800_s6 = smov [#allocation14]  }
  0x81   :  { %537 = vmatprep.subr.bf16.mxu1 %v797_v0  ;;  %496 = vmatprep.mubr.msk.f32.mxu1 %vm798_vm0, %v799_v1  ;;  %v535_v4 = vpack.c.bf16 %v116_v3, %v115_v2  ;;  %v203_v7 = vld [vmem:[#allocation8 + $0x10] sm:$0xff]  ;;  %v538_v8 = vpack.c.bf16 %v202_v6, %v201_v5  ;;  %v204_v9 = vld [vmem:[#allocation8 + $0x18] sm:$0xff]  ;;  %v114_v10 = vld [vmem:[#allocation2] sm:$0xff]  ;;  %s403_s13 = sshll.u32 %s800_s6, 4  ;;  %s404_s13 = int_to_ptr.vmem [resolvable:$true] %s403_s13 }
  0x82   :  { %v541_v11 = vpack.c.bf16 %v204_v9, %v203_v7  ;;  %v205_v12 = vld [vmem:[#allocation8 + $0x20] sm:$0xff]  ;;  %v206_v13 = vld [vmem:[#allocation8 + $0x28] sm:$0xff]  ;;  %v207_v15 = vld [vmem:[#allocation8 + $0x30] sm:$0xff]  ;;  %s756_s0 = scalar_lea.vmem %s404_s13, 128  ;;  %p761_p1 = scmp.lt.s32.totalorder %s404_s13, %s404_s13 }
  0x83   :  { %536 = vmatpush3.bf16.msra.mxu0 %v535_v4  ;;  %539 = vmatpush3.bf16.msra.mxu1 %v538_v8  ;;  %v544_v14 = vpack.c.bf16 %v206_v13, %v205_v12  ;;  %v208_v16 = vld [vmem:[#allocation8 + $0x38] sm:$0xff]  ;;  %v209_v18 = vld [vmem:[#allocation8 + $0x40] sm:$0xff]  ;;  %v210_v19 = vld [vmem:[#allocation8 + $0x48] sm:$0xff]  ;;  %p757_p0 = scmp.ne.s32.totalorder %s404_s13, %s756_s0  ;;  %p762_p2 = scmp.lt.s32.totalorder %s756_s0, %s756_s0 }
  0x84   :  { %561 = vmatprep.subr.bf16.mxu0 %v797_v0  ;;  %540 = vmatprep.subr.bf16.mxu1 %v797_v0  ;;  %v547_v17 = vpack.c.bf16 %v208_v16, %v207_v15  ;;  %v550_v20 = vpack.c.bf16 %v210_v19, %v209_v18  ;;  %v211_v21 = vld [vmem:[#allocation8 + $0x50] sm:$0xff]  ;;  %v212_v22 = vld [vmem:[#allocation8 + $0x58] sm:$0xff]  ;;  %v213_v24 = vld [vmem:[#allocation8 + $0x60] sm:$0xff] }
  0x85   :  { %v553_v23 = vpack.c.bf16 %v212_v22, %v211_v21  ;;  %v214_v25 = vld [vmem:[#allocation8 + $0x68] sm:$0xff]  ;;  %v215_v27 = vld [vmem:[#allocation8 + $0x70] sm:$0xff]  ;;  %v216_v28 = vld [vmem:[#allocation8 + $0x78] sm:$0xff]  ;;  %p763_p3 = por %p762_p2, %p761_p1 }
  0x86   :  { %462 = vmatmul.mubr.msk.f32.vlgmr.msra.gmra.mrb[0].mxu0 %vm124_vm1, %v114_v10  ;;  %v556_v26 = vpack.c.bf16 %v214_v25, %v213_v24  ;;  %v559_v29 = vpack.c.bf16 %v216_v28, %v215_v27  ;;  %v297_v30 = vld [vmem:[#allocation11] sm:$0xff]  ;;  %v298_v31 = vld [vmem:[#allocation11 + $0x8] sm:$0xff]  ;;  %v299_v32 = vld [vmem:[#allocation11 + $0x10] sm:$0xff] }
  0x87   :  { %531 = vmatprep.mubr.msk.f32.mxu0 %vm798_vm0, %v799_v1  ;;  %542 = vmatpush3.bf16.msra.mxu1 %v541_v11  ;;  %v562_v33 = vpack.c.bf16 %v298_v31, %v297_v30  ;;  %v300_v34 = vld [vmem:[#allocation11 + $0x18] sm:$0xff]  ;;  %v301_v36 = vld [vmem:[#allocation11 + $0x20] sm:$0xff]  ;;  %v302_v37 = vld [vmem:[#allocation11 + $0x28] sm:$0xff]  ;;  %p764_p4 = pnand %p763_p3, %p757_p0 }
  0x88   :  { %543 = vmatprep.subr.bf16.mxu1 %v797_v0  ;;  %v565_v35 = vpack.c.bf16 %v300_v34, %v299_v32  ;;  %v568_v38 = vpack.c.bf16 %v302_v37, %v301_v36  ;;  %v303_v39 = vld [vmem:[#allocation11 + $0x30] sm:$0xff]  ;;  %v304_v40 = vld [vmem:[#allocation11 + $0x38] sm:$0xff]  ;;  %v305_v42 = vld [vmem:[#allocation11 + $0x40] sm:$0xff] }
  0x89   :  { %563 = vmatpush3.bf16.msra.mxu0 %v562_v33  ;;  %v571_v41 = vpack.c.bf16 %v304_v40, %v303_v39  ;;  %v306_v43 = vld [vmem:[#allocation11 + $0x48] sm:$0xff]  ;;  %v307_v45 = vld [vmem:[#allocation11 + $0x50] sm:$0xff]  ;;  %v308_v46 = vld [vmem:[#allocation11 + $0x58] sm:$0xff] }
  0x8a   :  { %564 = vmatprep.subr.bf16.mxu0 %v797_v0  ;;  %v574_v44 = vpack.c.bf16 %v306_v43, %v305_v42  ;;  %v577_v47 = vpack.c.bf16 %v308_v46, %v307_v45  ;;  %v309_v48 = vld [vmem:[#allocation11 + $0x60] sm:$0xff]  ;;  %v310_v49 = vld [vmem:[#allocation11 + $0x68] sm:$0xff]  ;;  %v415_v51 = vld [vmem:[#allocation7] ss:$0 sm:$0xff] }
  0x8b   :  { %545 = vmatpush3.bf16.msra.mxu1 %v544_v14  ;;  %v580_v50 = vpack.c.bf16 %v310_v49, %v309_v48  ;;  %v311_v57 = vld [vmem:[#allocation11 + $0x70] sm:$0xff]  ;;  %v312_v58 = vld [vmem:[#allocation11 + $0x78] sm:$0xff] }
  0x8c   :  { %546 = vmatprep.subr.bf16.mxu1 %v797_v0  ;;  %v583_v59 = vpack.c.bf16 %v312_v58, %v311_v57  ;;  %v417_v60 = vld [vmem:[#allocation10] ss:$0 sm:$0xff] }
  0x8d   :  { %566 = vmatpush3.bf16.msra.mxu0 %v565_v35 }
  0x8e   :  { %567 = vmatprep.subr.bf16.mxu0 %v797_v0 }
  0x8f   :  { %548 = vmatpush3.bf16.msra.mxu1 %v547_v17 }
  0x90   :  { %549 = vmatprep.subr.bf16.mxu1 %v797_v0 }
  0x91   :  { %569 = vmatpush3.bf16.msra.mxu0 %v568_v38 }
  0x92   :  { %570 = vmatprep.subr.bf16.mxu0 %v797_v0 }
  0x93   :  { %551 = vmatpush3.bf16.msra.mxu1 %v550_v20 }
  0x94   :  { %552 = vmatprep.subr.bf16.mxu1 %v797_v0 }
  0x95   :  { %572 = vmatpush3.bf16.msra.mxu0 %v571_v41 }
  0x96   :  { %573 = vmatprep.subr.bf16.mxu0 %v797_v0 }
  0x97   :  { %554 = vmatpush3.bf16.msra.mxu1 %v553_v23 }
  0x98   :  { %555 = vmatprep.subr.bf16.mxu1 %v797_v0 }
  0x99   :  { %575 = vmatpush3.bf16.msra.mxu0 %v574_v44 }
  0x9a   :  { %576 = vmatprep.subr.bf16.mxu0 %v797_v0 }
  0x9b   :  { %557 = vmatpush3.bf16.msra.mxu1 %v556_v26 }
  0x9c   :  { %558 = vmatprep.subr.bf16.mxu1 %v797_v0 }
  0x9d   :  { %578 = vmatpush3.bf16.msra.mxu0 %v577_v47 }
  0x9e   :  { %579 = vmatprep.subr.bf16.mxu0 %v797_v0 }
  0x9f   :  { %560 = vmatpush3.bf16.msra.mxu1 %v559_v29 }
  0xa1   :  { %581 = vmatpush3.bf16.msra.mxu0 %v580_v50 }
  0xa2   :  { %582 = vmatprep.subr.bf16.mxu0 %v797_v0  ;;  %v418_v0 = vld [vmem:[#allocation13] ss:$0 sm:$0xff] }
  0xa5   :  { %584 = vmatpush3.bf16.msra.mxu0 %v583_v59 }
 0x159   :  { %v194_v52 = vpop.f32.mrb[0].mxu0 }
 0x15a   :  { %v195_v53 = vadd.f32 %v415_v51, %v194_v52  ;;  %v463_v54 = vpop.f32.mrb[1].mxu0 }
 0x15c   :  { %v199_v55 = vmul.f32 0.3, %v195_v53  ;;  %vm198_vm2 = vcmp.gt.f32.partialorder %v195_v53, 0.0 }
 0x15e   :  { %v200_v56 = vsel %vm198_vm2, %v195_v53, %v199_v55 }
 0x15f   :  { %497 = vmatmul.mubr.f32.vlgmr.msra.gmra.mrb[0].mxu1 %v200_v56 }
 0x232   :  { %v290_v61 = vpop.f32.mrb[0].mxu1 }
 0x233   :  { %v291_v62 = vadd.f32 %v417_v60, %v290_v61  ;;  %v498_v63 = vpop.f32.mrb[1].mxu1 }
 0x235   :  { %vm294_vm3 = vcmp.gt.f32.partialorder %v291_v62, 0.0  ;;  %v295_v1 = vmul.f32 0.3, %v291_v62 }
 0x237   :  { %v296_v2 = vsel %vm294_vm3, %v291_v62, %v295_v1 }
 0x238   :  { %532 = vmatmul.mubr.f32.vlgmr.msra.gmra.mrb[2].mxu0 %v296_v2 }
 0x30b   :  { %v386_v3 = vpop.f32.mrb[2].mxu0 }
 0x30c   :  { %v387_v4 = vadd.f32 %v418_v0, %v386_v3  ;;  %v533_v5 = vpop.f32.mrb[3].mxu0 }
 0x30e   :  { %v419_v6 = vmul.f32 -1.442695, %v387_v4 }
 0x310   :  { %598 = vpow2.f32 %v419_v6 }
 0x31a   :  { %v599_v7 = vpop.eup %598 }
 0x31b   :  { %v393_v8 = vadd.f32 1.0, %v599_v7 }
 0x31d   :  { %600 = vrcp.f32 %v393_v8 }
 0x327   :  { %v601_v9 = vpop.eup %600 }
 0x328   :  { %396 = vst [vmem:[#allocation14] sm:$0xff] %v601_v9 }
 0x329   :  { %767 = shalt.err (!%p764_p4)
}
 0x32a   :  { %s768_s15 = scalar_lea.hbm %s973_s7, 128 }
 0x32b   :  { %p769_p5 = scmp.ne.s32.totalorder %s973_s7, %s768_s15  ;;  %p772_p6 = scmp.lt.u32.totalorder %s768_s15, %s973_s7 }
 0x32d   :  { %p774_p7 = pnand %p772_p6, %p769_p5 }
 0x32f   :  { %777 = shalt.err (!%p774_p7)
}
 0x330   :  { %406 = dma.vmem_to_hbm [thread:$0]  %s404_s13, 128, %s973_s7, [#allocation4]  }
 0x331   :  { %786 = dma.done.wait [#allocation4], 128  }
 0x332   :  { %787 = vsyncadd [#allocation4], 4294967168 }
 0x333   :  { %410 = vsyncpa [#allocation3], 1 }
 0x334   :  { %411 = vsyncpa [#allocation6], 1 }
 0x335   :  { %412 = vsyncpa [#allocation9], 1 }
 0x336   :  { %413 = vsyncpa [#allocation12], 1 }
 0x337   :  { %414 = vsyncpa [#allocation4], 1 }

</bundles_post_ra>
